<compile_context>
chip_gen: v7x
topology: tpu7x:2x2x1
jax: 0.10.0
libtpu: 0.0.40
codegen_flags: <defaults>
</compile_context>

<pallas_src>
import jax
import jax.numpy as jnp
from jax.experimental import pallas as pl
from jax.experimental.pallas import tpu as pltpu

EPS = 1e-6
LANE = 128

# Component offsets inside the packed (21, rows, 128) input.
_D0, _SY0, _SN0, _SM0 = 0, 3, 9, 15
# Symmetric 3x3 packing order: (0,0),(0,1),(0,2),(1,1),(1,2),(2,2)
_SYM_IDX = ((0, 0), (0, 1), (0, 2), (1, 1), (1, 2), (2, 2))


def _dbsn_kernel(valid_ref, x_ref, sum_ref, t1max_ref):
    ci = pl.program_id(0)
    si = pl.program_id(1)

    @pl.when(si == 0)
    def _():
        sum_ref[...] = jnp.zeros_like(sum_ref)
        t1max_ref[...] = jnp.full_like(t1max_ref, -jnp.inf)

    r = x_ref.shape[1]  # static tile rows

    # Valid-pixel mask for this block (replaces a materialized identity pad).
    row0 = (ci * pl.num_programs(1) + si) * r
    rows = jax.lax.broadcasted_iota(jnp.int32, (r, LANE), 0)
    lanes = jax.lax.broadcasted_iota(jnp.int32, (r, LANE), 1)
    valid = (row0 + rows) * LANE + lanes < valid_ref[0]

    # ---- phase 1: t1 = 0.5 * d^T inv(sigma_y) d  (symmetric closed form) ----
    d0, d1, d2 = x_ref[_D0], x_ref[_D0 + 1], x_ref[_D0 + 2]
    y00, y01, y02, y11, y12, y22 = (x_ref[_SY0 + k] for k in range(6))
    cy00 = y11 * y22 - y12 * y12
    cy01 = y02 * y12 - y01 * y22
    cy02 = y01 * y12 - y02 * y11
    cy11 = y00 * y22 - y02 * y02
    cy12 = y01 * y02 - y00 * y12
    cy22 = y00 * y11 - y01 * y01
    det_y = y00 * cy00 + y01 * cy01 + y02 * cy02
    quad = (d0 * d0 * cy00 + d1 * d1 * cy11 + d2 * d2 * cy22
            + 2.0 * (d0 * d1 * cy01 + d0 * d2 * cy02 + d1 * d2 * cy12))
    # det_y deliberately unclamped (matches torch.inverse on singular sigma_y).
    t1 = 0.5 * quad * pl.reciprocal(det_y, approx=True)

    # ---- phase 2: t2 = 0.5 * log(clamp(det(sigma_n), eps))  (det only) ----
    n00, n01, n02, n11, n12, n22 = (x_ref[_SN0 + k] for k in range(6))
    det_n = (n00 * (n11 * n22 - n12 * n12)
             + n01 * (n02 * n12 - n01 * n22)
             + n02 * (n01 * n12 - n02 * n11))
    t2 = 0.5 * jnp.log(jnp.maximum(det_n, EPS))

    # ---- phase 3: t3 = 0.5 * trace(inv(sigma_n + eps*I) @ sigma_mu) ----
    # TODO(synk): `eigs_comp` is undefined in the reference; its output summed
    # over dim=(1,2) equals the sum of eigenvalues == trace of the product,
    # which is what we compute in closed (symmetric) form here.
    a00, a11, a22 = n00 + EPS, n11 + EPS, n22 + EPS
    ca00 = a11 * a22 - n12 * n12
    ca01 = n02 * n12 - n01 * a22
    ca02 = n01 * n12 - n02 * a11
    ca11 = a00 * a22 - n02 * n02
    ca12 = n01 * n02 - a00 * n12
    ca22 = a00 * a11 - n01 * n01
    det_a = a00 * ca00 + n01 * ca01 + n02 * ca02
    m00, m01, m02, m11, m12, m22 = (x_ref[_SM0 + k] for k in range(6))
    tr = (ca00 * m00 + ca11 * m11 + ca22 * m22
          + 2.0 * (ca01 * m01 + ca02 * m02 + ca12 * m12))
    t3 = 0.5 * tr * pl.reciprocal(det_a, approx=True)

    loss_px = t1 + t2 + t3                                   # (R, 128)
    # Per-lane accumulation into the resident (1, R, 128) output blocks.
    sum_ref[...] = sum_ref[...] + jnp.where(valid, loss_px, 0.0)[None]
    t1max_ref[...] = jnp.maximum(t1max_ref[...],
                                 jnp.where(valid, t1, -jnp.inf)[None])


def dbsn_loss_pretrain(target, mu, sigma_mu, sigma_n, sigma_y, *,
                       tile_rows=256, num_cores=2):
    """target, mu: (B, 3, H, W) NCHW; sigma_*: (B, H, W, 3, 3) symmetric.

    Returns the scalar loss. num_cores=2 feeds the v7x megacore split; on
    single-TC chips (v5e/v6e) it is just a harmless sequential grid axis.
    """
    target = jax.lax.stop_gradient(target)
    mu = jax.lax.stop_gradient(mu)
    b, c, m, n = target.shape
    assert c == 3, "DBSN loss expects 3 channels (3x3 covariance matrices)"
    p = b * m * n
    f32 = jnp.float32

    # --- tiling: pixels -> (rows, 128); rows split over (cores, steps, R) ---
    rows_total = pl.cdiv(p, LANE)
    r = max(1, min(tile_rows, pl.cdiv(rows_total, num_cores)))
    r = ((r + 7) // 8) * 8                        # sublane-multiple tile rows
    chunk = num_cores * r
    rows_padded = pl.cdiv(rows_total, chunk) * chunk
    p_padded = rows_padded * LANE
    pad_px = p_padded - p
    steps_per_core = rows_padded // chunk

    # --- single-pass, component-major, symmetric-packed repack ---
    # TODO(synk): ideally the upstream producer emits this component-major
    # symmetric layout directly so even this one repack pass disappears.
    diff = (target - mu).astype(f32)              # (B, 3, M, N)

    def prep(comp_1d):
        if pad_px:
            comp_1d = jnp.pad(comp_1d, (0, pad_px))   # pad value irrelevant (masked)
        return comp_1d.reshape(rows_padded, LANE)

    comps = [prep(diff[:, k].reshape(p)) for k in range(3)]
    for s in (sigma_y, sigma_n, sigma_mu):
        s = s.astype(f32)
        comps.extend(prep(s[..., i, j].reshape(p)) for i, j in _SYM_IDX)
    packed = jnp.stack(comps, axis=0)             # (21, rows_padded, 128)

    valid_count = jnp.array([p], jnp.int32)       # scalar-prefetched into SMEM

    sums, t1maxs = pl.pallas_call(
        _dbsn_kernel,
        out_shape=(jax.ShapeDtypeStruct((num_cores, r, LANE), f32),
                   jax.ShapeDtypeStruct((num_cores, r, LANE), f32)),
        grid_spec=pltpu.PrefetchScalarGridSpec(
            num_scalar_prefetch=1,
            grid=(num_cores, steps_per_core),
            in_specs=[pl.BlockSpec(
                (21, r, LANE),
                lambda ci, si, valid: (0, ci * steps_per_core + si, 0))],
            out_specs=(
                pl.BlockSpec((1, r, LANE), lambda ci, si, valid: (ci, 0, 0)),
                pl.BlockSpec((1, r, LANE), lambda ci, si, valid: (ci, 0, 0))),
        ),
        compiler_params=pltpu.CompilerParams(
            # TODO(synk): on v7x verify via xprof that this axis shards across
            # both TensorCores; if not, switch it to pltpu.CORE_PARALLEL.
            dimension_semantics=("parallel", "arbitrary"),
            vmem_limit_bytes=48 * 1024 * 1024),
    )(valid_count, packed)

    loss = jnp.sum(sums) / p
    t1max = jnp.max(t1maxs)
    # PyTorch: if t1.max() > 1e7: loss.data.zero_()  (NaN does not trigger, as in torch)
    return jnp.where(t1max > 1e7, jnp.zeros_like(loss), loss)


if __name__ == "__main__":
    key = jax.random.PRNGKey(0)
    b, c, m, n = 2, 3, 16, 16
    k1, k2, k3, k4, k5 = jax.random.split(key, 5)

    target = jax.random.normal(k1, (b, c, m, n), jnp.float32)
    mu = jax.random.normal(k2, (b, c, m, n), jnp.float32)

    def spd(k):
        # Symmetric positive-definite per-pixel 3x3 matrices (well conditioned).
        a = jax.random.normal(k, (b, m, n, 3, 3), jnp.float32)
        return jnp.einsum("bmnij,bmnkj->bmnik", a, a) + 0.5 * jnp.eye(3, dtype=jnp.float32)

    sigma_mu = spd(k3)
    sigma_n = spd(k4)
    sigma_y = spd(k5)

    loss = dbsn_loss_pretrain(target, mu, sigma_mu, sigma_n, sigma_y)
    jax.block_until_ready(loss)
    print("KERNEL_OK")
</pallas_src>

<mosaic_0001>
module attributes {stable_mosaic.version = 11 : i64} {
  func.func @_dbsn_kernel(%arg0: i32, %arg1: i32, %arg2: memref<1xi32, #tpu.memory_space<smem>>, %arg3: memref<21x8x128xf32, #tpu.memory_space<vmem>>, %arg4: memref<1x8x128xf32, #tpu.memory_space<vmem>>, %arg5: memref<1x8x128xf32, #tpu.memory_space<vmem>>) attributes {dimension_semantics = [#tpu.dimension_semantics<parallel>, #tpu.dimension_semantics<arbitrary>], iteration_bounds = array<i64: 2, 1>, scalar_prefetch = 1 : i64, scratch_operands = 0 : i64, tpu.core_type = #tpu.core_type<tc>, window_params = [{transform_indices = @transform_0, window_bounds = array<i64: 21, 8, 128>}, {transform_indices = @transform_1, window_bounds = array<i64: 1, 8, 128>}, {transform_indices = @transform_2, window_bounds = array<i64: 1, 8, 128>}]} {
    %c0_i32 = arith.constant 0 : i32
    %0 = arith.cmpi eq, %arg1, %c0_i32 : i32
    %1 = arith.extui %0 : i1 to i32
    %c0_i32_0 = arith.constant 0 : i32
    %2 = arith.cmpi ne, %1, %c0_i32_0 : i32
    scf.if %2 {
      %cst_66 = arith.constant 0.000000e+00 : f32
      %183 = vector.broadcast %cst_66 : f32 to vector<1x8x128xf32>
      %c0_67 = arith.constant 0 : index
      %c0_68 = arith.constant 0 : index
      %c0_69 = arith.constant 0 : index
      %184 = vector.load %arg4[%c0_67, %c0_68, %c0_69] : memref<1x8x128xf32, #tpu.memory_space<vmem>>, vector<1x8x128xf32>
      tpu.vector_store %arg4[%c0_67, %c0_68, %c0_69], %183 {strides = array<i32>} : memref<1x8x128xf32, #tpu.memory_space<vmem>>, vector<1x8x128xf32>,
      %cst_70 = arith.constant 0xFF800000 : f32
      %185 = vector.broadcast %cst_70 : f32 to vector<1x8x128xf32>
      %c0_71 = arith.constant 0 : index
      %c0_72 = arith.constant 0 : index
      %c0_73 = arith.constant 0 : index
      %186 = vector.load %arg5[%c0_71, %c0_72, %c0_73] : memref<1x8x128xf32, #tpu.memory_space<vmem>>, vector<1x8x128xf32>
      tpu.vector_store %arg5[%c0_71, %c0_72, %c0_73], %185 {strides = array<i32>} : memref<1x8x128xf32, #tpu.memory_space<vmem>>, vector<1x8x128xf32>,
    } else {
    }
    %c1_i32 = arith.constant 1 : i32
    %3 = arith.muli %arg0, %c1_i32 : i32
    %4 = arith.addi %3, %arg1 : i32
    %c8_i32 = arith.constant 8 : i32
    %5 = arith.muli %4, %c8_i32 : i32
    %6 = tpu.iota {dimensions = array<i32: 0>} : vector<8x128xi32>
    %7 = tpu.iota {dimensions = array<i32: 1>} : vector<8x128xi32>
    %8 = vector.broadcast %5 : i32 to vector<8x128xi32>
    %9 = arith.addi %8, %6 : vector<8x128xi32>
    %c128_i32 = arith.constant 128 : i32
    %10 = vector.broadcast %c128_i32 : i32 to vector<8x128xi32>
    %11 = arith.muli %9, %10 : vector<8x128xi32>
    %12 = arith.addi %11, %7 : vector<8x128xi32>
    %c0 = arith.constant 0 : index
    %13 = memref.load %arg2[%c0] : memref<1xi32, #tpu.memory_space<smem>>
    %14 = vector.broadcast %13 : i32 to vector<8x128xi32>
    %15 = arith.cmpi slt, %12, %14 : vector<8x128xi32>
    %c0_1 = arith.constant 0 : index
    %c0_2 = arith.constant 0 : index
    %c0_3 = arith.constant 0 : index
    %16 = vector.load %arg3[%c0_1, %c0_2, %c0_3] : memref<21x8x128xf32, #tpu.memory_space<vmem>>, vector<1x8x128xf32>
    %17 = vector.shape_cast %16 : vector<1x8x128xf32> to vector<8x128xf32>
    %c1 = arith.constant 1 : index
    %c0_4 = arith.constant 0 : index
    %c0_5 = arith.constant 0 : index
    %18 = vector.load %arg3[%c1, %c0_4, %c0_5] : memref<21x8x128xf32, #tpu.memory_space<vmem>>, vector<1x8x128xf32>
    %19 = vector.shape_cast %18 : vector<1x8x128xf32> to vector<8x128xf32>
    %c2 = arith.constant 2 : index
    %c0_6 = arith.constant 0 : index
    %c0_7 = arith.constant 0 : index
    %20 = vector.load %arg3[%c2, %c0_6, %c0_7] : memref<21x8x128xf32, #tpu.memory_space<vmem>>, vector<1x8x128xf32>
    %21 = vector.shape_cast %20 : vector<1x8x128xf32> to vector<8x128xf32>
    %c3 = arith.constant 3 : index
    %c0_8 = arith.constant 0 : index
    %c0_9 = arith.constant 0 : index
    %22 = vector.load %arg3[%c3, %c0_8, %c0_9] : memref<21x8x128xf32, #tpu.memory_space<vmem>>, vector<1x8x128xf32>
    %23 = vector.shape_cast %22 : vector<1x8x128xf32> to vector<8x128xf32>
    %c4 = arith.constant 4 : index
    %c0_10 = arith.constant 0 : index
    %c0_11 = arith.constant 0 : index
    %24 = vector.load %arg3[%c4, %c0_10, %c0_11] : memref<21x8x128xf32, #tpu.memory_space<vmem>>, vector<1x8x128xf32>
    %25 = vector.shape_cast %24 : vector<1x8x128xf32> to vector<8x128xf32>
    %c5 = arith.constant 5 : index
    %c0_12 = arith.constant 0 : index
    %c0_13 = arith.constant 0 : index
    %26 = vector.load %arg3[%c5, %c0_12, %c0_13] : memref<21x8x128xf32, #tpu.memory_space<vmem>>, vector<1x8x128xf32>
    %27 = vector.shape_cast %26 : vector<1x8x128xf32> to vector<8x128xf32>
    %c6 = arith.constant 6 : index
    %c0_14 = arith.constant 0 : index
    %c0_15 = arith.constant 0 : index
    %28 = vector.load %arg3[%c6, %c0_14, %c0_15] : memref<21x8x128xf32, #tpu.memory_space<vmem>>, vector<1x8x128xf32>
    %29 = vector.shape_cast %28 : vector<1x8x128xf32> to vector<8x128xf32>
    %c7 = arith.constant 7 : index
    %c0_16 = arith.constant 0 : index
    %c0_17 = arith.constant 0 : index
    %30 = vector.load %arg3[%c7, %c0_16, %c0_17] : memref<21x8x128xf32, #tpu.memory_space<vmem>>, vector<1x8x128xf32>
    %31 = vector.shape_cast %30 : vector<1x8x128xf32> to vector<8x128xf32>
    %c8 = arith.constant 8 : index
    %c0_18 = arith.constant 0 : index
    %c0_19 = arith.constant 0 : index
    %32 = vector.load %arg3[%c8, %c0_18, %c0_19] : memref<21x8x128xf32, #tpu.memory_space<vmem>>, vector<1x8x128xf32>
    %33 = vector.shape_cast %32 : vector<1x8x128xf32> to vector<8x128xf32>
    %34 = arith.mulf %29, %33 : vector<8x128xf32>
    %35 = arith.mulf %31, %31 : vector<8x128xf32>
    %36 = arith.subf %34, %35 : vector<8x128xf32>
    %37 = arith.mulf %27, %31 : vector<8x128xf32>
    %38 = arith.mulf %25, %33 : vector<8x128xf32>
    %39 = arith.subf %37, %38 : vector<8x128xf32>
    %40 = arith.mulf %25, %31 : vector<8x128xf32>
    %41 = arith.mulf %27, %29 : vector<8x128xf32>
    %42 = arith.subf %40, %41 : vector<8x128xf32>
    %43 = arith.mulf %23, %33 : vector<8x128xf32>
    %44 = arith.mulf %27, %27 : vector<8x128xf32>
    %45 = arith.subf %43, %44 : vector<8x128xf32>
    %46 = arith.mulf %25, %27 : vector<8x128xf32>
    %47 = arith.mulf %23, %31 : vector<8x128xf32>
    %48 = arith.subf %46, %47 : vector<8x128xf32>
    %49 = arith.mulf %23, %29 : vector<8x128xf32>
    %50 = arith.mulf %25, %25 : vector<8x128xf32>
    %51 = arith.subf %49, %50 : vector<8x128xf32>
    %52 = arith.mulf %23, %36 : vector<8x128xf32>
    %53 = arith.mulf %25, %39 : vector<8x128xf32>
    %54 = arith.addf %52, %53 : vector<8x128xf32>
    %55 = arith.mulf %27, %42 : vector<8x128xf32>
    %56 = arith.addf %54, %55 : vector<8x128xf32>
    %57 = arith.mulf %17, %17 : vector<8x128xf32>
    %58 = arith.mulf %57, %36 : vector<8x128xf32>
    %59 = arith.mulf %19, %19 : vector<8x128xf32>
    %60 = arith.mulf %59, %45 : vector<8x128xf32>
    %61 = arith.addf %58, %60 : vector<8x128xf32>
    %62 = arith.mulf %21, %21 : vector<8x128xf32>
    %63 = arith.mulf %62, %51 : vector<8x128xf32>
    %64 = arith.addf %61, %63 : vector<8x128xf32>
    %65 = arith.mulf %17, %19 : vector<8x128xf32>
    %66 = arith.mulf %65, %39 : vector<8x128xf32>
    %67 = arith.mulf %17, %21 : vector<8x128xf32>
    %68 = arith.mulf %67, %42 : vector<8x128xf32>
    %69 = arith.addf %66, %68 : vector<8x128xf32>
    %70 = arith.mulf %19, %21 : vector<8x128xf32>
    %71 = arith.mulf %70, %48 : vector<8x128xf32>
    %72 = arith.addf %69, %71 : vector<8x128xf32>
    %cst = arith.constant 2.000000e+00 : f32
    %73 = vector.broadcast %cst : f32 to vector<8x128xf32>
    %74 = arith.mulf %73, %72 : vector<8x128xf32>
    %75 = arith.addf %64, %74 : vector<8x128xf32>
    %cst_20 = arith.constant 5.000000e-01 : f32
    %76 = vector.broadcast %cst_20 : f32 to vector<8x128xf32>
    %77 = arith.mulf %76, %75 : vector<8x128xf32>
    %78 = tpu.reciprocal %56 {approx = true} : vector<8x128xf32> -> vector<8x128xf32>
    %79 = arith.mulf %77, %78 : vector<8x128xf32>
    %c9 = arith.constant 9 : index
    %c0_21 = arith.constant 0 : index
    %c0_22 = arith.constant 0 : index
    %80 = vector.load %arg3[%c9, %c0_21, %c0_22] : memref<21x8x128xf32, #tpu.memory_space<vmem>>, vector<1x8x128xf32>
    %81 = vector.shape_cast %80 : vector<1x8x128xf32> to vector<8x128xf32>
    %c10 = arith.constant 10 : index
    %c0_23 = arith.constant 0 : index
    %c0_24 = arith.constant 0 : index
    %82 = vector.load %arg3[%c10, %c0_23, %c0_24] : memref<21x8x128xf32, #tpu.memory_space<vmem>>, vector<1x8x128xf32>
    %83 = vector.shape_cast %82 : vector<1x8x128xf32> to vector<8x128xf32>
    %c11 = arith.constant 11 : index
    %c0_25 = arith.constant 0 : index
    %c0_26 = arith.constant 0 : index
    %84 = vector.load %arg3[%c11, %c0_25, %c0_26] : memref<21x8x128xf32, #tpu.memory_space<vmem>>, vector<1x8x128xf32>
    %85 = vector.shape_cast %84 : vector<1x8x128xf32> to vector<8x128xf32>
    %c12 = arith.constant 12 : index
    %c0_27 = arith.constant 0 : index
    %c0_28 = arith.constant 0 : index
    %86 = vector.load %arg3[%c12, %c0_27, %c0_28] : memref<21x8x128xf32, #tpu.memory_space<vmem>>, vector<1x8x128xf32>
    %87 = vector.shape_cast %86 : vector<1x8x128xf32> to vector<8x128xf32>
    %c13 = arith.constant 13 : index
    %c0_29 = arith.constant 0 : index
    %c0_30 = arith.constant 0 : index
    %88 = vector.load %arg3[%c13, %c0_29, %c0_30] : memref<21x8x128xf32, #tpu.memory_space<vmem>>, vector<1x8x128xf32>
    %89 = vector.shape_cast %88 : vector<1x8x128xf32> to vector<8x128xf32>
    %c14 = arith.constant 14 : index
    %c0_31 = arith.constant 0 : index
    %c0_32 = arith.constant 0 : index
    %90 = vector.load %arg3[%c14, %c0_31, %c0_32] : memref<21x8x128xf32, #tpu.memory_space<vmem>>, vector<1x8x128xf32>
    %91 = vector.shape_cast %90 : vector<1x8x128xf32> to vector<8x128xf32>
    %92 = arith.mulf %87, %91 : vector<8x128xf32>
    %93 = arith.mulf %89, %89 : vector<8x128xf32>
    %94 = arith.subf %92, %93 : vector<8x128xf32>
    %95 = arith.mulf %81, %94 : vector<8x128xf32>
    %96 = arith.mulf %85, %89 : vector<8x128xf32>
    %97 = arith.mulf %83, %91 : vector<8x128xf32>
    %98 = arith.subf %96, %97 : vector<8x128xf32>
    %99 = arith.mulf %83, %98 : vector<8x128xf32>
    %100 = arith.addf %95, %99 : vector<8x128xf32>
    %101 = arith.mulf %83, %89 : vector<8x128xf32>
    %102 = arith.mulf %85, %87 : vector<8x128xf32>
    %103 = arith.subf %101, %102 : vector<8x128xf32>
    %104 = arith.mulf %85, %103 : vector<8x128xf32>
    %105 = arith.addf %100, %104 : vector<8x128xf32>
    %cst_33 = arith.constant 9.99999997E-7 : f32
    %106 = vector.broadcast %cst_33 : f32 to vector<8x128xf32>
    %107 = arith.maximumf %105, %106 : vector<8x128xf32>
    %108 = math.log %107 : vector<8x128xf32>
    %cst_34 = arith.constant 5.000000e-01 : f32
    %109 = vector.broadcast %cst_34 : f32 to vector<8x128xf32>
    %110 = arith.mulf %109, %108 : vector<8x128xf32>
    %cst_35 = arith.constant 9.99999997E-7 : f32
    %111 = vector.broadcast %cst_35 : f32 to vector<8x128xf32>
    %112 = arith.addf %81, %111 : vector<8x128xf32>
    %cst_36 = arith.constant 9.99999997E-7 : f32
    %113 = vector.broadcast %cst_36 : f32 to vector<8x128xf32>
    %114 = arith.addf %87, %113 : vector<8x128xf32>
    %cst_37 = arith.constant 9.99999997E-7 : f32
    %115 = vector.broadcast %cst_37 : f32 to vector<8x128xf32>
    %116 = arith.addf %91, %115 : vector<8x128xf32>
    %117 = arith.mulf %114, %116 : vector<8x128xf32>
    %118 = arith.mulf %89, %89 : vector<8x128xf32>
    %119 = arith.subf %117, %118 : vector<8x128xf32>
    %120 = arith.mulf %85, %89 : vector<8x128xf32>
    %121 = arith.mulf %83, %116 : vector<8x128xf32>
    %122 = arith.subf %120, %121 : vector<8x128xf32>
    %123 = arith.mulf %83, %89 : vector<8x128xf32>
    %124 = arith.mulf %85, %114 : vector<8x128xf32>
    %125 = arith.subf %123, %124 : vector<8x128xf32>
    %126 = arith.mulf %112, %116 : vector<8x128xf32>
    %127 = arith.mulf %85, %85 : vector<8x128xf32>
    %128 = arith.subf %126, %127 : vector<8x128xf32>
    %129 = arith.mulf %83, %85 : vector<8x128xf32>
    %130 = arith.mulf %112, %89 : vector<8x128xf32>
    %131 = arith.subf %129, %130 : vector<8x128xf32>
    %132 = arith.mulf %112, %114 : vector<8x128xf32>
    %133 = arith.mulf %83, %83 : vector<8x128xf32>
    %134 = arith.subf %132, %133 : vector<8x128xf32>
    %135 = arith.mulf %112, %119 : vector<8x128xf32>
    %136 = arith.mulf %83, %122 : vector<8x128xf32>
    %137 = arith.addf %135, %136 : vector<8x128xf32>
    %138 = arith.mulf %85, %125 : vector<8x128xf32>
    %139 = arith.addf %137, %138 : vector<8x128xf32>
    %c15 = arith.constant 15 : index
    %c0_38 = arith.constant 0 : index
    %c0_39 = arith.constant 0 : index
    %140 = vector.load %arg3[%c15, %c0_38, %c0_39] : memref<21x8x128xf32, #tpu.memory_space<vmem>>, vector<1x8x128xf32>
    %141 = vector.shape_cast %140 : vector<1x8x128xf32> to vector<8x128xf32>
    %c16 = arith.constant 16 : index
    %c0_40 = arith.constant 0 : index
    %c0_41 = arith.constant 0 : index
    %142 = vector.load %arg3[%c16, %c0_40, %c0_41] : memref<21x8x128xf32, #tpu.memory_space<vmem>>, vector<1x8x128xf32>
    %143 = vector.shape_cast %142 : vector<1x8x128xf32> to vector<8x128xf32>
    %c17 = arith.constant 17 : index
    %c0_42 = arith.constant 0 : index
    %c0_43 = arith.constant 0 : index
    %144 = vector.load %arg3[%c17, %c0_42, %c0_43] : memref<21x8x128xf32, #tpu.memory_space<vmem>>, vector<1x8x128xf32>
    %145 = vector.shape_cast %144 : vector<1x8x128xf32> to vector<8x128xf32>
    %c18 = arith.constant 18 : index
    %c0_44 = arith.constant 0 : index
    %c0_45 = arith.constant 0 : index
    %146 = vector.load %arg3[%c18, %c0_44, %c0_45] : memref<21x8x128xf32, #tpu.memory_space<vmem>>, vector<1x8x128xf32>
    %147 = vector.shape_cast %146 : vector<1x8x128xf32> to vector<8x128xf32>
    %c19 = arith.constant 19 : index
    %c0_46 = arith.constant 0 : index
    %c0_47 = arith.constant 0 : index
    %148 = vector.load %arg3[%c19, %c0_46, %c0_47] : memref<21x8x128xf32, #tpu.memory_space<vmem>>, vector<1x8x128xf32>
    %149 = vector.shape_cast %148 : vector<1x8x128xf32> to vector<8x128xf32>
    %c20 = arith.constant 20 : index
    %c0_48 = arith.constant 0 : index
    %c0_49 = arith.constant 0 : index
    %150 = vector.load %arg3[%c20, %c0_48, %c0_49] : memref<21x8x128xf32, #tpu.memory_space<vmem>>, vector<1x8x128xf32>
    %151 = vector.shape_cast %150 : vector<1x8x128xf32> to vector<8x128xf32>
    %152 = arith.mulf %119, %141 : vector<8x128xf32>
    %153 = arith.mulf %128, %147 : vector<8x128xf32>
    %154 = arith.addf %152, %153 : vector<8x128xf32>
    %155 = arith.mulf %134, %151 : vector<8x128xf32>
    %156 = arith.addf %154, %155 : vector<8x128xf32>
    %157 = arith.mulf %122, %143 : vector<8x128xf32>
    %158 = arith.mulf %125, %145 : vector<8x128xf32>
    %159 = arith.addf %157, %158 : vector<8x128xf32>
    %160 = arith.mulf %131, %149 : vector<8x128xf32>
    %161 = arith.addf %159, %160 : vector<8x128xf32>
    %cst_50 = arith.constant 2.000000e+00 : f32
    %162 = vector.broadcast %cst_50 : f32 to vector<8x128xf32>
    %163 = arith.mulf %162, %161 : vector<8x128xf32>
    %164 = arith.addf %156, %163 : vector<8x128xf32>
    %cst_51 = arith.constant 5.000000e-01 : f32
    %165 = vector.broadcast %cst_51 : f32 to vector<8x128xf32>
    %166 = arith.mulf %165, %164 : vector<8x128xf32>
    %167 = tpu.reciprocal %139 {approx = true} : vector<8x128xf32> -> vector<8x128xf32>
    %168 = arith.mulf %166, %167 : vector<8x128xf32>
    %169 = arith.addf %79, %110 : vector<8x128xf32>
    %170 = arith.addf %169, %168 : vector<8x128xf32>
    %c0_52 = arith.constant 0 : index
    %c0_53 = arith.constant 0 : index
    %c0_54 = arith.constant 0 : index
    %171 = vector.load %arg4[%c0_52, %c0_53, %c0_54] : memref<1x8x128xf32, #tpu.memory_space<vmem>>, vector<1x8x128xf32>
    %cst_55 = arith.constant 0.000000e+00 : f32
    %172 = vector.broadcast %cst_55 : f32 to vector<8x128xf32>
    %173 = arith.select %15, %170, %172 : vector<8x128xi1>, vector<8x128xf32>
    %174 = vector.shape_cast %173 : vector<8x128xf32> to vector<1x8x128xf32>
    %175 = arith.addf %171, %174 : vector<1x8x128xf32>
    %c0_56 = arith.constant 0 : index
    %c0_57 = arith.constant 0 : index
    %c0_58 = arith.constant 0 : index
    %176 = vector.load %arg4[%c0_56, %c0_57, %c0_58] : memref<1x8x128xf32, #tpu.memory_space<vmem>>, vector<1x8x128xf32>
    tpu.vector_store %arg4[%c0_56, %c0_57, %c0_58], %175 {strides = array<i32>} : memref<1x8x128xf32, #tpu.memory_space<vmem>>, vector<1x8x128xf32>,
    %c0_59 = arith.constant 0 : index
    %c0_60 = arith.constant 0 : index
    %c0_61 = arith.constant 0 : index
    %177 = vector.load %arg5[%c0_59, %c0_60, %c0_61] : memref<1x8x128xf32, #tpu.memory_space<vmem>>, vector<1x8x128xf32>
    %cst_62 = arith.constant 0xFF800000 : f32
    %178 = vector.broadcast %cst_62 : f32 to vector<8x128xf32>
    %179 = arith.select %15, %79, %178 : vector<8x128xi1>, vector<8x128xf32>
    %180 = vector.shape_cast %179 : vector<8x128xf32> to vector<1x8x128xf32>
    %181 = arith.maximumf %177, %180 : vector<1x8x128xf32>
    %c0_63 = arith.constant 0 : index
    %c0_64 = arith.constant 0 : index
    %c0_65 = arith.constant 0 : index
    %182 = vector.load %arg5[%c0_63, %c0_64, %c0_65] : memref<1x8x128xf32, #tpu.memory_space<vmem>>, vector<1x8x128xf32>
    tpu.vector_store %arg5[%c0_63, %c0_64, %c0_65], %181 {strides = array<i32>} : memref<1x8x128xf32, #tpu.memory_space<vmem>>, vector<1x8x128xf32>,
    return
  }
  func.func @transform_0(%arg0: i32, %arg1: i32, %arg2: memref<1xi32, #tpu.memory_space<smem>>) -> (i32, i32, i32) {
    %c1_i32 = arith.constant 1 : i32
    %0 = arith.muli %arg0, %c1_i32 : i32
    %1 = arith.addi %0, %arg1 : i32
    %c0_i32 = arith.constant 0 : i32
    %c0_i32_0 = arith.constant 0 : i32
    %c0_i32_1 = arith.constant 0 : i32
    return %c0_i32, %1, %c0_i32_0 : i32, i32, i32
  }
  func.func @transform_1(%arg0: i32, %arg1: i32, %arg2: memref<1xi32, #tpu.memory_space<smem>>) -> (i32, i32, i32) {
    %c0_i32 = arith.constant 0 : i32
    %c0_i32_0 = arith.constant 0 : i32
    %c0_i32_1 = arith.constant 0 : i32
    return %arg0, %c0_i32, %c0_i32_0 : i32, i32, i32
  }
  func.func @transform_2(%arg0: i32, %arg1: i32, %arg2: memref<1xi32, #tpu.memory_space<smem>>) -> (i32, i32, i32) {
    %c0_i32 = arith.constant 0 : i32
    %c0_i32_0 = arith.constant 0 : i32
    %c0_i32_1 = arith.constant 0 : i32
    return %arg0, %c0_i32, %c0_i32_0 : i32, i32, i32
  }
}

</mosaic_0001>

<bundles_post_ra>
// kernel: tpu_custom_call.1
= control target key start
LH: loop header
LB: loop body
LE: loop exit
PB: predicated region body
PF: predicated region fallthrough
CT: control target
= control target key end

     0   :  { %s1042_s0 = inlined_call_operand.<no memory space> [shape: s32[1], index: 0, kind: input, shape index: {}]   ;;  %s1043_s1 = inlined_call_operand.hbm [shape: f32[21,16,128], index: 1, kind: input, shape index: {}]   ;;  %s1044_s2 = inlined_call_operand.hbm [shape: f32[2,8,128], index: 2, kind: output, shape index: {0}]   ;;  %s1045_s3 = inlined_call_operand.hbm [shape: f32[2,8,128], index: 3, kind: output, shape index: {1}]  }
   0x1   :  { %9 = sst [smem:[#allocation3]] %s1042_s0 }
   0x2   :  { %10 = vsyncpa [#allocation5], 0 }
   0x3   :  { %12 = vsyncpa [#allocation5 + $0x1], 0 }
   0x4   :  { %13 = vsyncpa [#allocation6], 0 }
   0x5   :  { %15 = vsyncpa [#allocation6 + $0x1], 0 }
   0x6   :  { %16 = vsyncpa [#allocation9], 0 }
   0x7   :  { %18 = vsyncpa [#allocation9 + $0x1], 0  ;;  %s793_s14 = smov 0   ;;  %s795_s15 = smov 0  }
   0x8   :  { %s797_s16 = smov 0   ;;  %s799_s17 = smov 0  }
   0x9   :  { %s801_s18 = smov 0   ;;  %s803_s19 = smov 0  }
   0xa LB: > { %s503_s0 = sadd.s32 4294967295, %s762_s19   ;;  %s504_s20 = sadd.s32 4294967294, %s762_s19   ;;  %s762_s19 = sphi %s803_s19, %s24_s19   ;;  %s758_s18 = sphi %s801_s18, %s1061_s18   ;;  %s754_s17 = sphi %s799_s17, %s1060_s17   ;;  %s750_s16 = sphi %s797_s16, %s1059_s16   ;;  %s746_s15 = sphi %s795_s15, %s1058_s15   ;;  %s742_s14 = sphi %s793_s14, %s1057_s14  }
   0xb   : > { %s36_s21 = sadd.s32 1, %s758_s18  ;;  %s45_s22 = sadd.s32 1, %s750_s16 }
   0xc   : > { %p38_p0 = scmp.ge.s32.totalorder %s36_s21, 2  ;;  %p52_p1 = scmp.ne.s32.totalorder %s750_s16, %s746_s15 }
   0xd   : > { %p53_p2 = scmp.eq.s32.totalorder %s762_s19, 0  ;;  %p58_p3 = scmp.ne.s32.totalorder %s746_s15, %s742_s14 }
   0xe   : > { %s1063_s21 = smov (%p38_p0, %s36_s21), 0  ;;  %p59_p5 = scmp.eq.s32.totalorder %s503_s0, 0 }
   0xf   : > { %p834_p4 = por %p53_p2, %p52_p1  ;;  %s42_s24 = ssub.s32 %s758_s18, %s1063_s21 }
  0x10   : > { %p82_p6 = scmp.eq.s32.totalorder %s503_s0, 1  ;;  %p43_p7 = scmp.eq.s32.totalorder %s42_s24, 0 }
  0x11   : > { %p840_p8 = por %p59_p5, %p58_p3  ;;  %p88_p10 = scmp.eq.s32.totalorder %s504_s20, 1 }
  0x12   : > { %p844_p9 = por %p82_p6, %p52_p1  ;;  %p557_p13 = scmp.lt.s32.totalorder %s762_s19, 2 }
  0x13   : > { %s849_s27 = scalar_select %p43_p7, %s750_s16, %s45_s22  }
  0x14   : > { %s1049_s26 = scalar_select %p844_p9, 1, 0 }
  0x15   : > { %p851_p11 = por %p88_p10, %p58_p3  ;;  %s134_s29 = sand.u32 1, %s750_s16  }
  0x16   : > { %s538_s30 = smul.u32 168, %s134_s29  ;;  %s507_s4 = sshll.u32 %s758_s18, 7 }
  0x17   : > { %s1050_s28 = scalar_select %p851_p11, 1, 0 }
  0x18   : > { %p861_p0 = pnand %p557_p13, %p834_p4  ;;  %s868_s8 = scalar_lea.hbm %s1043_s1, %s507_s4 }
  0x19   : > { %s138_s9 = scalar_lea.vmem [#allocation4], %s538_s30  ;;  %s872_s11 = scalar_lea.sflag [#allocation5], %s134_s29 }
  0x1a   : > { %s145_s10 = sshll.u32 %s138_s9, 4  ;;  %s618_s12 = scalar_lea.hbm %s868_s8, 2688  ;;  %s870_s10 = int_to_ptr.vmem [resolvable:$true] %s145_s10 }
  0x1b   : > { %p619_p1 = scmp.ne.s32.totalorder %s868_s8, %s618_s12  ;;  %p620_p2 = pneg %p861_p0 }
  0x1c   : > { %s623_s20 = scalar_lea.hbm %s1043_s1, 5376  ;;  %p624_p5 = scmp.lt.u32.totalorder %s868_s8, %s1043_s1 }
  0x1d   : > { %p621_p3 = pnand %p620_p2, %p619_p1  ;;  %p625_p6 = scmp.lt.u32.totalorder %s623_s20, %s618_s12 }
  0x1e   : > { %p627_p10 = scmp.lt.u32.totalorder %s618_s12, %s868_s8 }
  0x1f   : > { %p622_p4 = pneg %p621_p3  ;;  %p626_p7 = por %p625_p6, %p624_p5 }
  0x21   : > { %p628_p13 = por %p627_p10, %p626_p7 }
  0x23   : > { %p629_p12 = pnand %p628_p13, %p622_p4 }
  0x25   : > { %632 = shalt.err (!%p629_p12)
}
  0x26   : > { %s633_s24 = scalar_lea.vmem %s870_s10, 2688  ;;  %s764_s29 = smov [#allocation4]  }
  0x27   : > { %p634_p1 = scmp.ne.s32.totalorder %s870_s10, %s633_s24  ;;  %s638_s30 = sshll.u32 %s764_s29, 4  ;;  %s639_s30 = int_to_ptr.vmem [resolvable:$false] %s638_s30 }
  0x28   : > { %s640_s4 = scalar_lea.vmem %s639_s30, 5376  ;;  %p641_p9 = scmp.lt.s32.totalorder %s870_s10, %s639_s30 }
  0x29   : > { %p636_p3 = pnand %p634_p1, %p620_p2  ;;  %p642_p5 = scmp.lt.s32.totalorder %s640_s4, %s633_s24 }
  0x2b   : > { %p637_p11 = pneg %p636_p3  ;;  %p643_p6 = por %p642_p5, %p641_p9 }
  0x2d   : > { %p644_p7 = pnand %p643_p6, %p637_p11 }
  0x2f   : > { %647 = shalt.err (!%p644_p7)
}
  0x30   : > { %s765_s6 = smov 256   ;;  %s766_s7 = smov 128  }
  0x31   : > { %s767_s9 = smov 8   ;;  %p508_p12 = scmp.ge.s32.totalorder %s762_s19, 1 }
  0x32   : > { %549 = dma.hbm_to_vmem [thread:$0]  (!%p861_p0), %s868_s8, 2688, %s870_s10, %s872_s11, %s765_s6, %s766_s7, %s767_s9  }
  0x33   : > { %p153_p2 = scmp.lt.s32.totalorder %s762_s19, 3 }
  0x35   : > { %p154_p4 = pnand %p508_p12, %p153_p2 }
  0x36   : > { %s903_s12 = sand.u32 (!%p154_p4), 1, %s746_s15  }
  0x37   : > { %157 = sbr.rel (%p154_p4) target bundleno = 132 (0x84), region = 24  ;;  %s160_s0 = scalar_lea.sflag (!%p154_p4), [#allocation5], %s903_s12 }
  0x38   : > { %s539_s13 = smul.u32 (!%p154_p4), 168, %s903_s12 }
  0x3a   : > { %s907_s20 = scalar_lea.vmem (!%p154_p4), [#allocation4], %s539_s13 }
  0x3e   : > { %729 = dma.done.wait (%p840_p8), %s160_s0, 2688  }
  0x3f   : > { %731 = vsyncadd (%p840_p8), %s160_s0, 4294964608  ;;  %s511_s5 = sshll.u32 %s754_s17, 3  ;;  %v198_v0 = vlaneseq  ;;  %s914_s8 = sld [smem:[#allocation3]]  ;;  %v209_v6 = vld [vmem:[%s907_s20] sm:$0xff]  ;;  %v512_v7 = vld [vmem:[%s907_s20 + $0x8] sm:$0xff] }
  0x40   : > { %v202_v1 = vstv %s511_s5  ;;  %v513_v10 = vld [vmem:[%s907_s20 + $0x10] sm:$0xff]  ;;  %v515_v11 = vld [vmem:[%s907_s20 + $0x20] sm:$0xff]  ;;  %v516_v12 = vld [vmem:[%s907_s20 + $0x28] sm:$0xff]  ;;  %v249_v13 = vmul.f32 %v209_v6, %v209_v6  ;;  %v251_v20 = vmul.f32 %v512_v7, %v512_v7  ;;  %v257_v33 = vmul.f32 %v512_v7, %v209_v6  ;;  %s509_s25 = sshll.u32 %s903_s12, 3  ;;  %s534_s10 = sshll.u32 %s754_s17, 7 }
  0x41   : > { %v199_v2 = vshrl.u32 %v198_v0, 7  ;;  %v201_v3 = vand.u32 127, %v198_v0  ;;  %v517_v14 = vld [vmem:[%s907_s20 + $0x30] sm:$0xff]  ;;  %v518_v15 = vld [vmem:[%s907_s20 + $0x38] sm:$0xff]  ;;  %v519_v16 = vld [vmem:[%s907_s20 + $0x40] sm:$0xff]  ;;  %v236_v17 = vmul.f32 %v516_v12, %v516_v12  ;;  %v238_v18 = vmul.f32 %v516_v12, %v515_v11  ;;  %s188_s11 = scalar_lea.vmem [#allocation8], %s509_s25  ;;  %s958_s29 = scalar_lea.hbm %s1045_s3, %s534_s10 }
  0x42   : > { %v242_v19 = vmul.f32 %v515_v11, %v515_v11  ;;  %v514_v21 = vld [vmem:[%s907_s20 + $0x18] sm:$0xff]  ;;  %v226_v22 = vmul.f32 %v519_v16, %v517_v14  ;;  %v227_v23 = vmul.f32 %v518_v15, %v518_v15  ;;  %v229_v24 = vmul.f32 %v518_v15, %v516_v12  ;;  %v523_v38 = vld [vmem:[%s907_s20 + $0x60] sm:$0xff]  ;;  %v525_v39 = vld [vmem:[%s907_s20 + $0x70] sm:$0xff]  ;;  %s392_s22 = sshll.u32 %s188_s11, 4  ;;  %s366_s30 = scalar_lea.sflag [#allocation9], %s903_s12  ;;  %s960_s22 = int_to_ptr.vmem [resolvable:$true] %s392_s22 }
  0x43   : > { %v203_v4 = vadd.s32 %v202_v1, %v199_v2  ;;  %v254_v25 = vmul.f32 %v513_v10, %v513_v10  ;;  %v230_v26 = vmul.f32 %v519_v16, %v515_v11  ;;  %v232_v27 = vmul.f32 %v518_v15, %v515_v11  ;;  %v522_v44 = vld [vmem:[%s907_s20 + $0x58] sm:$0xff]  ;;  %v524_v45 = vld [vmem:[%s907_s20 + $0x68] sm:$0xff]  ;;  %v521_v50 = vld [vmem:[%s907_s20 + $0x50] sm:$0xff]  ;;  %s648_s4 = scalar_lea.vmem %s960_s22, 128  ;;  %p1054_p9 = scmp.ne.s32.totalorder %s1049_s26, 0 }
  0x44   : > { %v233_v28 = vmul.f32 %v517_v14, %v516_v12  ;;  %v235_v29 = vmul.f32 %v519_v16, %v514_v21  ;;  %v228_v30 = vsub.f32 %v226_v22, %v227_v23  ;;  %v239_v31 = vmul.f32 %v518_v15, %v514_v21  ;;  %v520_v61 = vld [vmem:[%s907_s20 + $0x48] sm:$0xff]  ;;  %p649_p8 = scmp.ne.s32.totalorder %s960_s22, %s648_s4  ;;  %s768_s6 = smov [#allocation8]  }
  0x45   : > { %v204_v5 = vmul.u32 128, %v203_v4  ;;  %v207_v9 = vstv %s914_s8  ;;  %v241_v32 = vmul.f32 %v517_v14, %v514_v21  ;;  %v231_v34 = vsub.f32 %v229_v24, %v230_v26  ;;  %s652_s7 = sshll.u32 %s768_s6, 4  ;;  %s653_s7 = int_to_ptr.vmem [resolvable:$false] %s652_s7 }
  0x46   : > { %v234_v35 = vsub.f32 %v232_v27, %v233_v28  ;;  %v237_v36 = vsub.f32 %v235_v29, %v236_v17  ;;  %v259_v37 = vmul.f32 %v513_v10, %v209_v6  ;;  %v240_v40 = vsub.f32 %v238_v18, %v239_v31  ;;  %v526_v29 = vld [vmem:[%s907_s20 + $0x78] sm:$0xff]  ;;  %p650_p11 = pnand %p649_p8, %p1054_p9  ;;  %s654_s9 = scalar_lea.vmem %s653_s7, 256 }
  0x47   : > { %v918_v8 = vadd.s32 %v204_v5, %v201_v3  ;;  %v243_v41 = vsub.f32 %v241_v32, %v242_v19  ;;  %v244_v42 = vmul.f32 %v514_v21, %v228_v30  ;;  %v250_v43 = vmul.f32 %v249_v13, %v228_v30  ;;  %v529_v30 = vld [vmem:[%s907_s20 + $0x90] sm:$0xff]  ;;  %p655_p10 = scmp.lt.s32.totalorder %s960_s22, %s653_s7  ;;  %p656_p13 = scmp.lt.s32.totalorder %s654_s9, %s648_s4 }
  0x48   : > { %v245_v46 = vmul.f32 %v515_v11, %v231_v34  ;;  %v247_v47 = vmul.f32 %v516_v12, %v234_v35  ;;  %v252_v48 = vmul.f32 %v251_v20, %v237_v36  ;;  %v258_v49 = vmul.f32 %v257_v33, %v231_v34  ;;  %v528_v36 = vld [vmem:[%s907_s20 + $0x88] sm:$0xff]  ;;  %p651_p0 = pneg %p650_p11 }
  0x49   : > { %v255_v51 = vmul.f32 %v254_v25, %v243_v41  ;;  %v260_v52 = vmul.f32 %v259_v37, %v234_v35  ;;  %v262_v53 = vmul.f32 %v513_v10, %v512_v7  ;;  %v282_v54 = vmul.f32 %v525_v39, %v523_v38  ;;  %v527_v35 = vld [vmem:[%s907_s20 + $0x80] sm:$0xff]  ;;  %v530_v37 = vld [vmem:[%s907_s20 + $0x98] sm:$0xff]  ;;  %p657_p1 = por %p656_p13, %p655_p10 }
  0x4a   : > { %v246_v55 = vadd.f32 %v245_v46, %v244_v42  ;;  %v253_v56 = vadd.f32 %v252_v48, %v250_v43  ;;  %v283_v57 = vmul.f32 %v524_v45, %v524_v45  ;;  %v286_v58 = vmul.f32 %v524_v45, %v522_v44  ;;  %v531_v42 = vld [vmem:[%s907_s20 + $0xa0] sm:$0xff] }
  0x4b   : > { %v261_v59 = vadd.f32 %v260_v52, %v258_v49  ;;  %v263_v60 = vmul.f32 %v262_v53, %v240_v40  ;;  %v287_v62 = vmul.f32 %v525_v39, %v521_v50  ;;  %v291_v63 = vmul.f32 %v524_v45, %v521_v50  ;;  %p658_p3 = pnand %p657_p1, %p651_p0 }
  0x4c   : > { %v248_v0 = vadd.f32 %v247_v47, %v246_v55  ;;  %v256_v1 = vadd.f32 %v255_v51, %v253_v56  ;;  %v284_v2 = vsub.f32 %v282_v54, %v283_v57  ;;  %v292_v3 = vmul.f32 %v523_v38, %v522_v44 }
  0x4d   : > { %v264_v4 = vadd.f32 %v263_v60, %v261_v59  ;;  %v288_v5 = vsub.f32 %v286_v58, %v287_v62  ;;  %v300_v6 = vadd.f32 1e-06, %v520_v61  ;;  %v301_v11 = vadd.f32 1e-06, %v523_v38 }
  0x4e   : > { %612 = vrcp.f32 %v248_v0  ;;  %v285_v7 = vmul.f32 %v520_v61, %v284_v2  ;;  %v293_v10 = vsub.f32 %v291_v63, %v292_v3  ;;  %v302_v12 = vadd.f32 1e-06, %v525_v39 }
  0x4f   : > { %v265_v13 = vmul.f32 2.0, %v264_v4  ;;  %v289_v14 = vmul.f32 %v521_v50, %v288_v5  ;;  %v307_v15 = vmul.f32 %v522_v44, %v301_v11  ;;  %v310_v16 = vmul.f32 %v522_v44, %v522_v44 }
  0x50   : > { %v294_v17 = vmul.f32 %v522_v44, %v293_v10  ;;  %v303_v18 = vmul.f32 %v302_v12, %v301_v11  ;;  %v305_v19 = vmul.f32 %v521_v50, %v302_v12  ;;  %v309_v20 = vmul.f32 %v302_v12, %v300_v6 }
  0x51   : > { %v266_v21 = vadd.f32 %v265_v13, %v256_v1  ;;  %v290_v22 = vadd.f32 %v289_v14, %v285_v7  ;;  %v308_v23 = vsub.f32 %v291_v63, %v307_v15  ;;  %v312_v24 = vmul.f32 %v522_v44, %v521_v50 }
  0x52   : > { %v304_v25 = vsub.f32 %v303_v18, %v283_v57  ;;  %v306_v26 = vsub.f32 %v286_v58, %v305_v19  ;;  %v311_v27 = vsub.f32 %v309_v20, %v310_v16  ;;  %v313_v28 = vmul.f32 %v524_v45, %v300_v6 }
  0x53   : > { %v267_v31 = vmul.f32 0.5, %v266_v21  ;;  %v295_v32 = vadd.f32 %v294_v17, %v290_v22  ;;  %v315_v33 = vmul.f32 %v301_v11, %v300_v6  ;;  %v316_v34 = vmul.f32 %v521_v50, %v521_v50 }
  0x54   : > { %v314_v38 = vsub.f32 %v312_v24, %v313_v28  ;;  %v318_v39 = vmul.f32 %v304_v25, %v300_v6  ;;  %v319_v40 = vmul.f32 %v521_v50, %v306_v26  ;;  %v321_v41 = vmul.f32 %v522_v44, %v308_v23 }
  0x55   : > { %v296_v43 = vmax.f32 %v295_v32, 1e-06  ;;  %v317_v46 = vsub.f32 %v315_v33, %v316_v34  ;;  %v335_v45 = vmul.f32 %v526_v29, %v304_v25  ;;  %v336_v47 = vmul.f32 %v529_v30, %v311_v27 }
  0x56   : > { %v320_v48 = vadd.f32 %v319_v40, %v318_v39  ;;  %v340_v49 = vmul.f32 %v527_v35, %v306_v26  ;;  %v341_v51 = vmul.f32 %v528_v36, %v308_v23  ;;  %v343_v52 = vmul.f32 %v530_v37, %v314_v38 }
  0x57   : > { %614 = vlog2.f32 %v296_v43  ;;  %v337_v53 = vadd.f32 %v336_v47, %v335_v45  ;;  %v338_v54 = vmul.f32 %v531_v42, %v317_v46  ;;  %vm944_vm0 = vcmp.lt.s32.totalorder %v918_v8, %v207_v9 }
  0x58   : > { %v613_v55 = vpop.eup %612  ;;  %v322_v50 = vadd.f32 %v321_v41, %v320_v48  ;;  %v342_v56 = vadd.f32 %v341_v51, %v340_v49 }
  0x59   : > { %v269_v57 = vmul.f32 %v613_v55, %v267_v31  ;;  %v339_v58 = vadd.f32 %v338_v54, %v337_v53 }
  0x5a   : > { %v344_v59 = vadd.f32 %v343_v52, %v342_v56  ;;  %616 = vrcp.f32 %v322_v50 }
  0x5b   : > { %v357_v60 = vsel %vm944_vm0, %v269_v57, -inf }
  0x5c   : > { %v345_v61 = vmul.f32 2.0, %v344_v59  ;;  %359 = vst [vmem:[%s188_s11] sm:$0xff] %v357_v60 }
  0x5e   : > { %v346_v8 = vadd.f32 %v345_v61, %v339_v58 }
  0x5f   : > { %661 = shalt.err (!%p658_p3)
}
  0x60   : > { %s662_s13 = scalar_lea.hbm %s958_s29, 128  ;;  %s666_s5 = scalar_lea.hbm %s1045_s3, 256 }
  0x61   : > { %p663_p5 = scmp.ne.s32.totalorder %s958_s29, %s662_s13  ;;  %p667_p12 = scmp.lt.u32.totalorder %s958_s29, %s1045_s3 }
  0x62   : > { %p668_p2 = scmp.lt.u32.totalorder %s666_s5, %s662_s13  ;;  %p670_p8 = scmp.lt.u32.totalorder %s662_s13, %s958_s29 }
  0x63   : > { %p664_p6 = pnand %p663_p5, %p1054_p9 }
  0x64   : > { %p669_p4 = por %p668_p2, %p667_p12 }
  0x65   : > { %p665_p7 = pneg %p664_p6 }
  0x66   : > { %p671_p11 = por %p670_p8, %p669_p4 }
  0x68   : > { %p672_p0 = pnand %p671_p11, %p665_p7 }
  0x6a   : > { %675 = shalt.err (!%p672_p0)
}
  0x6b   : > { %543 = dma.vmem_to_hbm [thread:$0]  (%p1054_p9), %s960_s22, 128, %s958_s29, %s366_s30   ;;  %v615_v9 = vpop.eup %614  ;;  %v347_v62 = vmul.f32 0.5, %v346_v8 }
  0x6c   : > { %v298_v63 = vmul.f32 0.6931472, %v615_v9  ;;  %v617_v0 = vpop.eup %616  ;;  %s181_s23 = scalar_lea.vmem [#allocation7], %s509_s25  ;;  %s993_s22 = scalar_lea.hbm %s1044_s2, %s534_s10 }
  0x6d   : > { %v349_v2 = vmul.f32 %v617_v0, %v347_v62  ;;  %s379_s24 = sshll.u32 %s181_s23, 4  ;;  %s361_s29 = scalar_lea.sflag [#allocation6], %s903_s12  ;;  %s995_s24 = int_to_ptr.vmem [resolvable:$true] %s379_s24 }
  0x6e   : > { %v299_v1 = vmul.f32 0.5, %v298_v63  ;;  %s676_s30 = scalar_lea.vmem %s995_s24, 128  ;;  %s769_s25 = smov [#allocation7]  }
  0x6f   : > { %p677_p10 = scmp.ne.s32.totalorder %s995_s24, %s676_s30  ;;  %s680_s7 = sshll.u32 %s769_s25, 4  ;;  %s681_s7 = int_to_ptr.vmem [resolvable:$false] %s680_s7 }
  0x70   : > { %v350_v3 = vadd.f32 %v299_v1, %v269_v57  ;;  %s682_s17 = scalar_lea.vmem %s681_s7, 256  ;;  %p683_p3 = scmp.lt.s32.totalorder %s995_s24, %s681_s7 }
  0x71   : > { %p678_p13 = pnand %p677_p10, %p1054_p9  ;;  %p684_p5 = scmp.lt.s32.totalorder %s682_s17, %s676_s30 }
  0x72   : > { %v351_v4 = vadd.f32 %v350_v3, %v349_v2 }
  0x73   : > { %p679_p1 = pneg %p678_p13  ;;  %p685_p6 = por %p684_p5, %p683_p3 }
  0x74   : > { %v353_v5 = vsel %vm944_vm0, %v351_v4, 0.0 }
  0x75   : > { %355 = vst [vmem:[%s181_s23] sm:$0xff] %v353_v5  ;;  %p686_p7 = pnand %p685_p6, %p679_p1 }
  0x77   : > { %689 = shalt.err (!%p686_p7)
}
  0x78   : > { %s690_s12 = scalar_lea.hbm %s993_s22, 128  ;;  %s694_s13 = scalar_lea.hbm %s1044_s2, 256 }
  0x79   : > { %p691_p12 = scmp.ne.s32.totalorder %s993_s22, %s690_s12  ;;  %p695_p8 = scmp.lt.u32.totalorder %s993_s22, %s1044_s2 }
  0x7a   : > { %p696_p11 = scmp.lt.u32.totalorder %s694_s13, %s690_s12  ;;  %p698_p10 = scmp.lt.u32.totalorder %s690_s12, %s993_s22 }
  0x7b   : > { %p692_p2 = pnand %p691_p12, %p1054_p9 }
  0x7c   : > { %p697_p0 = por %p696_p11, %p695_p8 }
  0x7d   : > { %p693_p4 = pneg %p692_p2 }
  0x7e   : > { %p699_p13 = por %p698_p10, %p697_p0 }
  0x80   : > { %p700_p1 = pnand %p699_p13, %p693_p4 }
  0x82   : > { %703 = shalt.err (!%p700_p1)
}
  0x83   : > { %542 = dma.vmem_to_hbm [thread:$0]  (%p1054_p9), %s995_s24, 128, %s993_s22, %s361_s29  }
  0x84 PF: > { %s404_s5 = sand.u32 1, %s742_s14   ;;  %p1055_p3 = scmp.ne.s32.totalorder %s1050_s28, 0 }
  0x85   : > { %p1056_p5 = scmp.ge.s32.totalorder %s762_s19, 2  ;;  %s405_s8 = scalar_lea.sflag [#allocation6], %s404_s5 }
  0x87   : > { %p551_p6 = pnand %p1056_p5, %p1055_p3 }
  0x89   : > { %733 = dma.done.wait (!%p551_p6), %s405_s8, 128  }
  0x8a   : > { %735 = vsyncadd (!%p551_p6), %s405_s8, 4294967168  ;;  %s414_s11 = scalar_lea.sflag [#allocation9], %s404_s5 }
  0x8b   : > { %737 = dma.done.wait (!%p551_p6), %s414_s11, 128  }
  0x8c   : > { %739 = vsyncadd (!%p551_p6), %s414_s11, 4294967168  ;;  %s24_s19 = sadd.s32 1, %s762_s19   ;;  %s1057_s14 = smov %s746_s15 }
  0x8d   : > { %p21_p7 = scmp.ge.s32.totalorder %s24_s19, 4   ;;  %s1058_s15 = smov %s750_s16 }
  0x8e   : > { %s1059_s16 = smov %s849_s27  ;;  %s1060_s17 = smov %s758_s18 }
  0x8f   : > { %s1061_s18 = smov %s1063_s21  ;;  %23 = sbr.rel (!%p21_p7) target bundleno = 10 (0xa), region = 110 }
  0x96   :  { %419 = vsyncpa [#allocation5], 1 }
  0x97   :  { %421 = vsyncpa [#allocation5 + $0x1], 1 }
  0x98   :  { %422 = vsyncpa [#allocation6], 1 }
  0x99   :  { %424 = vsyncpa [#allocation6 + $0x1], 1 }
  0x9a   :  { %425 = vsyncpa [#allocation9], 1 }
  0x9b   :  { %427 = vsyncpa [#allocation9 + $0x1], 1 }

</bundles_post_ra>
